<compile_context>
chip_gen: v6e
topology: v6e:2x2x1
jax: 0.10.0
libtpu: 0.0.40
codegen_flags: <defaults>
</compile_context>

<pallas_src>
import functools
import math

import jax
import jax.numpy as jnp
from jax import lax
from jax.experimental import pallas as pl
from jax.experimental.pallas import tpu as pltpu


# ----------------------------------------------------------------------------
# Pass 1: row-wise L2 normalization of x, tiled over B; emits f32 + bf16.
# ----------------------------------------------------------------------------
def _normalize_rows_kernel(x_ref, xn_ref, xnb_ref):
    x = x_ref[...].astype(jnp.float32)
    # rsqrt(max(sumsq, eps^2)) == 1 / max(sqrt(sumsq), eps)  (F.normalize eps=1e-12)
    inv = lax.rsqrt(jnp.maximum(jnp.sum(x * x, axis=1, keepdims=True), 1e-24))
    xn = x * inv
    xn_ref[...] = xn
    xnb_ref[...] = xn.astype(jnp.bfloat16)


# ----------------------------------------------------------------------------
# Pass 2: per-class-tile normalize-W + cosine matmul + (optional) margin.
# ----------------------------------------------------------------------------
def _arcface_tile_kernel(*refs, s, m, tile_c, with_label, emit_theta, emit_wn):
    it = iter(refs)
    xnb_ref = next(it)                              # (B, F) bf16, pre-normalized
    w_ref = next(it)                                # (TILE_C, F) f32
    label_ref = next(it) if with_label else None    # (B, 1) int32
    out_ref = next(it)                              # (B, TILE_C) f32
    theta_ref = next(it) if emit_theta else None    # (B, TILE_C) f32
    wn_ref = next(it) if emit_wn else None          # (TILE_C, F) f32

    w = w_ref[...]
    # rsqrt per class row + one multiply per element (no per-element divide).
    inv = lax.rsqrt(jnp.maximum(jnp.sum(w * w, axis=1, keepdims=True), 1e-24))
    wn = w * inv                                    # f32 normalized rows
    if emit_wn:
        wn_ref[...] = wn

    # x @ W^T via contraction dims (no materialized transpose); bf16 MXU
    # inputs with f32 accumulation.
    # TODO(synk): a post-matmul per-class scale (matmul on unnormalized bf16 W)
    # would skip the wn f32 multiply when emit_wn=False, but needs a
    # (TILE_C,1)->(1,TILE_C) relayout; kept on the proven path for now.
    logits = lax.dot_general(
        xnb_ref[...], wn.astype(jnp.bfloat16),
        dimension_numbers=(((1,), (1,)), ((), ())),
        preferred_element_type=jnp.float32)         # (B, TILE_C)

    if emit_theta or with_label:
        clamped = jnp.clip(logits, -1.0 + 1e-07, 1.0 - 1e-07)
        if emit_theta:
            theta_ref[...] = jnp.arccos(clamped)

    if with_label:
        cos_m = math.cos(m)
        sin_m = math.sin(m)
        # cos(theta + m) = cos_m*cos(theta) - sin_m*sin(theta), sin(theta) >= 0.
        target = cos_m * clamped - sin_m * jnp.sqrt(1.0 - clamped * clamped)
        b = logits.shape[0]
        j = pl.program_id(0)
        cols = j * tile_c + lax.broadcasted_iota(jnp.int32, (b, tile_c), 1)
        is_target = cols == label_ref[...]          # (B,1) broadcasts to (B,TILE_C)
        out_ref[...] = s * jnp.where(is_target, target, logits)
    else:
        out_ref[...] = logits                       # raw cosine logits


# ----------------------------------------------------------------------------
# VMEM planning (per TPU generation).
# ----------------------------------------------------------------------------
def _vmem_capacity_bytes():
    try:
        return int(pltpu.get_tpu_info().vmem_capacity_bytes)
    except Exception:
        return 64 * 1024 * 1024          # conservative fallback (v7x per-TC size)


def _vmem_plan():
    cap = _vmem_capacity_bytes()
    budget = int(cap * 0.60)             # tile-sizing budget (headroom for compiler)
    limit = int(cap * 0.75)              # scoped VMEM limit handed to Mosaic
    return budget, limit


def _choose_tile_c(C, F, B, budget_bytes):
    """Largest 128-multiple class tile whose working set (BlockSpec I/O
    double-buffers PLUS in-kernel temporaries) fits the budget."""
    def working_set(tc):
        w_in = 2 * tc * F * 4                 # W input, double-buffered f32
        wn_out = 2 * tc * F * 4               # wn output blocks, double-buffered
        temps = tc * F * (4 + 2)              # wn f32 temp + bf16 MXU operand
        bc_io = 2 * 2 * B * tc * 4            # out + theta blocks, double-buffered
        bc_tmp = 6 * B * tc * 4               # logits/clamped/theta/target/mask temps
        resident = 2 * B * F * 2 + B * 128 * 4   # xn bf16 blocks + label block
        return w_in + wn_out + temps + bc_io + bc_tmp + resident

    tc = min(((C + 127) // 128) * 128, 8192)
    while tc > 128 and working_set(tc) > budget_bytes:
        tc -= 128
    return tc


# ----------------------------------------------------------------------------
# Forward wrapper (mirrors ArcFace.forward).
# ----------------------------------------------------------------------------
def arcface_forward(x, W, label=None, *, s=30.0, m=0.5,
                    return_theta=True, return_wn=True):
    """x: (B, num_features) f32;  W: (num_classes, num_features) f32;
    label: optional (B,) int32.  return_theta/return_wn=False skip those
    HBM writebacks entirely (outputs returned as None)."""
    B, F = x.shape
    C, F2 = W.shape
    assert F == F2
    x = x.astype(jnp.float32)
    W = W.astype(jnp.float32)

    budget, vmem_limit = _vmem_plan()

    # ---- Pass 1: normalize x once (tiled over B), emit f32 + bf16 copies.
    tile_b = B if B <= 1024 else 1024
    xn, xnb = pl.pallas_call(
        _normalize_rows_kernel,
        grid=(pl.cdiv(B, tile_b),),
        out_shape=(jax.ShapeDtypeStruct((B, F), jnp.float32),
                   jax.ShapeDtypeStruct((B, F), jnp.bfloat16)),
        in_specs=[pl.BlockSpec((tile_b, F), lambda i: (i, 0))],
        out_specs=(pl.BlockSpec((tile_b, F), lambda i: (i, 0)),
                   pl.BlockSpec((tile_b, F), lambda i: (i, 0))),
        compiler_params=pltpu.CompilerParams(
            dimension_semantics=("parallel",),
            vmem_limit_bytes=vmem_limit,
        ),
    )(x)

    # ---- Pass 2: class-tiled cosine / margin kernel (no jnp.pad copy of W:
    # the ragged last tile is handled by Pallas partial-block masking).
    tile_c = _choose_tile_c(C, F, B, budget)
    n_tiles = pl.cdiv(C, tile_c)

    with_label = label is not None
    kernel = functools.partial(
        _arcface_tile_kernel, s=float(s), m=float(m), tile_c=tile_c,
        with_label=with_label, emit_theta=return_theta, emit_wn=return_wn)

    # TODO(synk): tile the grid-invariant xn block over B too if batches grow
    # beyond what comfortably stays resident in VMEM.
    in_specs = [
        pl.BlockSpec((B, F), lambda j: (0, 0)),         # xn bf16 (grid-invariant)
        pl.BlockSpec((tile_c, F), lambda j: (j, 0)),    # W tile (streamed)
    ]
    args = [xnb, W]
    if with_label:
        label2d = label.astype(jnp.int32).reshape(B, 1)
        in_specs.append(pl.BlockSpec((B, 1), lambda j: (0, 0)))
        args.append(label2d)

    out_shapes = [jax.ShapeDtypeStruct((B, C), jnp.float32)]      # output/logits
    out_specs = [pl.BlockSpec((B, tile_c), lambda j: (0, j))]
    if return_theta:
        out_shapes.append(jax.ShapeDtypeStruct((B, C), jnp.float32))
        out_specs.append(pl.BlockSpec((B, tile_c), lambda j: (0, j)))
    if return_wn:
        out_shapes.append(jax.ShapeDtypeStruct((C, F), jnp.float32))
        out_specs.append(pl.BlockSpec((tile_c, F), lambda j: (j, 0)))

    outs = pl.pallas_call(
        kernel,
        out_shape=tuple(out_shapes),
        grid=(n_tiles,),
        in_specs=in_specs,
        out_specs=tuple(out_specs),
        compiler_params=pltpu.CompilerParams(
            # TODO(synk): evaluate pltpu.CORE_PARALLEL here for explicit
            # two-TensorCore sharding on v7x; tiles are fully independent.
            dimension_semantics=("parallel",),
            vmem_limit_bytes=vmem_limit,
        ),
    )(*args)
    if not isinstance(outs, (list, tuple)):
        outs = (outs,)

    idx = 0
    main = outs[idx]; idx += 1
    theta = None
    wn = None
    if return_theta:
        theta = outs[idx]; idx += 1
    if return_wn:
        wn = outs[idx]; idx += 1

    if not with_label:
        return main, theta, xn, wn                       # (logits, theta, x, W)
    return main, theta, s * jnp.ones((1,), jnp.float32), xn, wn


def xavier_uniform(key, shape):
    fan_out, fan_in = shape          # torch layout: (num_classes, num_features)
    bound = math.sqrt(6.0 / (fan_in + fan_out))
    return jax.random.uniform(key, shape, jnp.float32, -bound, bound)


if __name__ == "__main__":
    B, NUM_FEATURES, NUM_CLASSES = 8, 64, 128
    s, m = 30.0, 0.5

    key = jax.random.PRNGKey(0)
    kx, kw, kl, kw2 = jax.random.split(key, 4)
    x = jax.random.normal(kx, (B, NUM_FEATURES), jnp.float32)
    W = xavier_uniform(kw, (NUM_CLASSES, NUM_FEATURES))
    label = jax.random.randint(kl, (B,), 0, NUM_CLASSES, jnp.int32)

    # Pallas kernel (label path, full module outputs)
    output, theta, s_out, xn, wn = arcface_forward(x, W, label, s=s, m=m)
    jax.block_until_ready((output, theta, s_out, xn, wn))

    # Pallas kernel (label=None path)
    logits0, theta0, xn0, wn0 = arcface_forward(x, W, None, s=s, m=m)
    jax.block_until_ready((logits0, theta0, xn0, wn0))

    # Pallas kernel (label path, output-only: skips theta/wn writeback)
    output_lite, theta_lite, _, _, wn_lite = arcface_forward(
        x, W, label, s=s, m=m, return_theta=False, return_wn=False)
    jax.block_until_ready(output_lite)
    assert theta_lite is None and wn_lite is None

    # Pure-JAX f32 reference
    xn_ref = x / jnp.maximum(
        jnp.sqrt(jnp.sum(x * x, axis=1, keepdims=True)), 1e-12)
    wn_ref = W / jnp.maximum(
        jnp.sqrt(jnp.sum(W * W, axis=1, keepdims=True)), 1e-12)
    logits_ref = xn_ref @ wn_ref.T
    theta_ref = jnp.arccos(jnp.clip(logits_ref, -1.0 + 1e-07, 1.0 - 1e-07))
    target_ref = jnp.cos(theta_ref + m)
    one_hot_ref = jax.nn.one_hot(label, NUM_CLASSES, dtype=jnp.float32)
    out_ref = (logits_ref * (1 - one_hot_ref) + target_ref * one_hot_ref) * s

    # Normalizations are pure f32 (rsqrt) -> tight tolerance.
    assert jnp.allclose(xn, xn_ref, atol=1e-5, rtol=1e-5)
    assert jnp.allclose(wn, wn_ref, atol=1e-5, rtol=1e-5)
    assert jnp.allclose(xn0, xn_ref, atol=1e-5, rtol=1e-5)
    assert jnp.allclose(wn0, wn_ref, atol=1e-5, rtol=1e-5)
    # Matmul uses bf16 MXU inputs with f32 accumulation -> looser tolerances.
    assert jnp.allclose(logits0, logits_ref, atol=1e-2, rtol=1e-2)
    assert jnp.allclose(theta, theta_ref, atol=2e-2, rtol=1e-2)
    assert jnp.allclose(theta0, theta_ref, atol=2e-2, rtol=1e-2)
    assert jnp.allclose(output, out_ref, atol=2.5e-1, rtol=2e-2)
    assert jnp.allclose(output_lite, out_ref, atol=2.5e-1, rtol=2e-2)
    assert jnp.allclose(s_out, s * jnp.ones((1,), jnp.float32))

    # Ragged class count (C not a multiple of the tile) exercises the
    # no-pad path with masked partial blocks.
    C2 = 320
    W2 = xavier_uniform(kw2, (C2, NUM_FEATURES))
    logits2, theta2, xn2, wn2 = arcface_forward(x, W2, None, s=s, m=m)
    jax.block_until_ready((logits2, theta2, xn2, wn2))
    wn2_ref = W2 / jnp.maximum(
        jnp.sqrt(jnp.sum(W2 * W2, axis=1, keepdims=True)), 1e-12)
    logits2_ref = xn_ref @ wn2_ref.T
    theta2_ref = jnp.arccos(jnp.clip(logits2_ref, -1.0 + 1e-07, 1.0 - 1e-07))
    assert wn2.shape == (C2, NUM_FEATURES) and logits2.shape == (B, C2)
    assert jnp.allclose(wn2, wn2_ref, atol=1e-5, rtol=1e-5)
    assert jnp.allclose(logits2, logits2_ref, atol=1e-2, rtol=1e-2)
    assert jnp.allclose(theta2, theta2_ref, atol=2e-2, rtol=1e-2)

    print("KERNEL_OK")
</pallas_src>

<mosaic_0001>
module attributes {stable_mosaic.version = 11 : i64} {
  func.func @_normalize_rows_kernel(%arg0: i32, %arg1: memref<8x64xf32, #tpu.memory_space<vmem>>, %arg2: memref<8x64xf32, #tpu.memory_space<vmem>>, %arg3: memref<8x64xbf16, #tpu.memory_space<vmem>>) attributes {dimension_semantics = [#tpu.dimension_semantics<parallel>], iteration_bounds = array<i64: 1>, scalar_prefetch = 0 : i64, scratch_operands = 0 : i64, tpu.core_type = #tpu.core_type<tc>, window_params = [{transform_indices = @transform_0, window_bounds = array<i64: 8, 64>}, {transform_indices = @transform_1, window_bounds = array<i64: 8, 64>}, {transform_indices = @transform_2, window_bounds = array<i64: 8, 64>}]} {
    %c0 = arith.constant 0 : index
    %c0_0 = arith.constant 0 : index
    %0 = vector.load %arg1[%c0, %c0_0] : memref<8x64xf32, #tpu.memory_space<vmem>>, vector<8x64xf32>
    %1 = arith.mulf %0, %0 : vector<8x64xf32>
    %cst = arith.constant dense<0.000000e+00> : vector<8xf32>
    %2 = vector.multi_reduction <add>, %1, %cst [1] : vector<8x64xf32> to vector<8xf32>
    %3 = vector.shape_cast %2 : vector<8xf32> to vector<8x1xf32>
    %cst_1 = arith.constant 1.000000e-24 : f32
    %4 = vector.broadcast %cst_1 : f32 to vector<8x1xf32>
    %5 = arith.maximumf %3, %4 : vector<8x1xf32>
    %6 = math.rsqrt %5 : vector<8x1xf32>
    %7 = vector.broadcast %6 : vector<8x1xf32> to vector<8x64xf32>
    %8 = arith.mulf %0, %7 : vector<8x64xf32>
    %c0_2 = arith.constant 0 : index
    %c0_3 = arith.constant 0 : index
    %9 = vector.load %arg2[%c0_2, %c0_3] : memref<8x64xf32, #tpu.memory_space<vmem>>, vector<8x64xf32>
    tpu.vector_store %arg2[%c0_2, %c0_3], %8 {strides = array<i32>} : memref<8x64xf32, #tpu.memory_space<vmem>>, vector<8x64xf32>,
    %10 = arith.truncf %8 : vector<8x64xf32> to vector<8x64xbf16>
    %c0_4 = arith.constant 0 : index
    %c0_5 = arith.constant 0 : index
    %11 = vector.load %arg3[%c0_4, %c0_5] : memref<8x64xbf16, #tpu.memory_space<vmem>>, vector<8x64xbf16>
    tpu.vector_store %arg3[%c0_4, %c0_5], %10 {strides = array<i32>} : memref<8x64xbf16, #tpu.memory_space<vmem>>, vector<8x64xbf16>,
    return
  }
  func.func @transform_0(%arg0: i32) -> (i32, i32) {
    %c0_i32 = arith.constant 0 : i32
    %c0_i32_0 = arith.constant 0 : i32
    return %arg0, %c0_i32 : i32, i32
  }
  func.func @transform_1(%arg0: i32) -> (i32, i32) {
    %c0_i32 = arith.constant 0 : i32
    %c0_i32_0 = arith.constant 0 : i32
    return %arg0, %c0_i32 : i32, i32
  }
  func.func @transform_2(%arg0: i32) -> (i32, i32) {
    %c0_i32 = arith.constant 0 : i32
    %c0_i32_0 = arith.constant 0 : i32
    return %arg0, %c0_i32 : i32, i32
  }
}

</mosaic_0001>

<bundles_post_ra>
// kernel: tpu_custom_call.1
= control target key start
LH: loop header
LB: loop body
LE: loop exit
PB: predicated region body
PF: predicated region fallthrough
CT: control target
= control target key end

     0   :  { %8 = vsyncpa [#allocation3], 0  ;;  %s164_s0 = inlined_call_operand.hbm [shape: f32[8,64], index: 0, kind: input, shape index: {}]   ;;  %s165_s1 = inlined_call_operand.hbm [shape: f32[8,64], index: 1, kind: output, shape index: {0}]   ;;  %s166_s2 = inlined_call_operand.hbm [shape: bf16[8,64], index: 2, kind: output, shape index: {1}]  }
   0x1   :  { %9 = vsyncpa [#allocation4], 0 }
   0x2   :  { %10 = vsyncpa [#allocation7], 0  ;;  %s137_s9 = smov [#allocation2]  }
   0x3   :  { %s17_s10 = sshll.u32 %s137_s9, 4  ;;  %s18_s10 = int_to_ptr.vmem [resolvable:$true] %s17_s10 }
   0x4   :  { %s79_s11 = scalar_lea.vmem %s18_s10, 128  ;;  %p84_p1 = scmp.lt.s32.totalorder %s18_s10, %s18_s10 }
   0x5   :  { %p80_p0 = scmp.ne.s32.totalorder %s18_s10, %s79_s11  ;;  %p85_p2 = scmp.lt.s32.totalorder %s79_s11, %s79_s11 }
   0x7   :  { %p86_p3 = por %p85_p2, %p84_p1 }
   0x9   :  { %p87_p4 = pnand %p86_p3, %p80_p0 }
   0xb   :  { %90 = shalt.err (!%p87_p4)
}
   0xc   :  { %20 = dma.hbm_to_vmem [thread:$0]  %s164_s0, 128, %s18_s10, [#allocation3]  }
   0xd   :  { %131 = dma.done.wait [#allocation3], 128  }
   0xe   :  { %132 = vsyncadd [#allocation3], 4294967168  ;;  %v24_v0 = vld [vmem:[#allocation2] sm:$0xff]  ;;  %vm26_vm0 = vcmask 523264   ;;  %s138_s14 = smov [#allocation5]   ;;  %s139_s16 = smov [#allocation6]  }
   0xf   :  { %v25_v1 = vmul.f32 %v24_v0, %v24_v0  ;;  %s43_s15 = sshll.u32 %s138_s14, 4  ;;  %s53_s17 = sshll.u32 %s139_s16, 4  ;;  %vm35_vm1 = vcmask 519168   ;;  %s44_s15 = int_to_ptr.vmem [resolvable:$true] %s43_s15  ;;  %s54_s17 = int_to_ptr.vmem [resolvable:$true] %s53_s17 }
  0x10   :  { %s91_s0 = scalar_lea.vmem %s44_s15, 128  ;;  %p96_p6 = scmp.lt.s32.totalorder %s44_s15, %s44_s15 }
  0x11   :  { %v27_v2 = vsel %vm26_vm0, %v25_v1, 0.0  ;;  %p92_p5 = scmp.ne.s32.totalorder %s44_s15, %s91_s0  ;;  %p97_p7 = scmp.lt.s32.totalorder %s91_s0, %s91_s0 }
  0x12   :  { %28 = vadd.xlane.f32.xlu0 %v27_v2 }
  0x13   :  { %p98_p8 = por %p97_p7, %p96_p6 }
  0x15   :  { %p99_p9 = pnand %p98_p8, %p92_p5 }
  0x9b   :  { %v29_v3 = vpop.xlane.xlu0 %28 }
  0x9c   :  { %v30_v4 = vmax.f32 %v29_v3, 1e-24 }
  0x9e   :  { %69 = vrsqrt.f32 %v30_v4 }
  0xab   :  { %v70_v5 = vpop.eup %69 }
  0xac   :  { %v32_v6 = vmul.f32 %v70_v5, %v24_v0 }
  0xae   :  { %33 = vst.msk [vmem:[#allocation5] sm:$0xff] %vm26_vm0, %v32_v6  ;;  %v34_v7 = vpack.c.bf16 %v32_v6, %v32_v6 }
  0xaf   :  { %102 = shalt.err (!%p99_p9)
}
  0xb0   :  { %46 = dma.vmem_to_hbm [thread:$0]  %s44_s15, 128, %s165_s1, [#allocation4]   ;;  %36 = vst.msk [vmem:[#allocation6] sm:$0xf] %vm35_vm1, %v34_v7 }
  0xb1   :  { %s111_s20 = scalar_lea.vmem %s54_s17, 64  ;;  %p116_p11 = scmp.lt.s32.totalorder %s54_s17, %s54_s17 }
  0xb2   :  { %p112_p10 = scmp.ne.s32.totalorder %s54_s17, %s111_s20  ;;  %p117_p12 = scmp.lt.s32.totalorder %s111_s20, %s111_s20 }
  0xb4   :  { %p118_p13 = por %p117_p12, %p116_p11 }
  0xb6   :  { %p119_p0 = pnand %p118_p13, %p112_p10 }
  0xb8   :  { %122 = shalt.err (!%p119_p0)
}
  0xb9   :  { %56 = dma.vmem_to_hbm [thread:$0]  %s54_s17, 64, %s166_s2, [#allocation7]  }
  0xba   :  { %133 = dma.done.wait [#allocation4], 128  }
  0xbb   :  { %134 = vsyncadd [#allocation4], 4294967168 }
  0xbc   :  { %135 = dma.done.wait [#allocation7], 64  }
  0xbd   :  { %136 = vsyncadd [#allocation7], 4294967232 }
  0xbe   :  { %63 = vsyncpa [#allocation3], 1 }
  0xbf   :  { %64 = vsyncpa [#allocation4], 1 }
  0xc0   :  { %65 = vsyncpa [#allocation7], 1 }

</bundles_post_ra>
